<compile_context>
chip_gen: v6e
topology: v6e:2x2x1
jax: 0.10.0
libtpu: 0.0.40
codegen_flags: <defaults>
</compile_context>

<pallas_src>
import functools

import jax
import jax.numpy as jnp
from jax.experimental import pallas as pl
from jax.experimental.pallas import tpu as pltpu


# -----------------------------------------------------------------------------
# Kernel body
# -----------------------------------------------------------------------------
def _addcoords_kernel(x_ref, coord_ref, o_ref, *, num_in_channels: int):
    """Copy the C input channels and append the precomputed coord channels.

    x_ref:     (1, C, TL)        input tile
    coord_ref: (n_coord, TL)     batch-invariant coordinate tile (stays
                                 VMEM-resident across the inner batch axis)
    o_ref:     (1, C + n_coord, TL)
    """
    C = num_in_channels
    # Pass-through channels: direct slice store (no concatenate temporary).
    o_ref[0, :C, :] = x_ref[0]
    # Coordinate channels.  NOTE: this store starts at sublane offset C; when C
    # is not sublane-aligned (multiple of 8 for f32) it costs one XLU rotate +
    # masked vst per lane group -- noise for an HBM-bound copy.
    o_ref[0, C:, :] = coord_ref[...]


# -----------------------------------------------------------------------------
# Sizing helpers
# -----------------------------------------------------------------------------
def _vmem_capacity_bytes() -> int:
    try:
        cap = int(getattr(pltpu.get_tpu_info(), "vmem_capacity_bytes"))
        if cap > 0:
            return cap
    except Exception:
        pass
    return 64 * 1024 * 1024  # conservative fallback (v7x per-TensorCore VMEM)


def _pick_lane_tile(L: int, max_lanes: int, gran: int) -> int:
    """Largest lane tile <= max_lanes; prefer one that divides L exactly (no
    masked boundary block) at `gran` then 128 alignment; else round down."""
    if L <= max_lanes:
        return L
    cap = max(128, (max_lanes // 128) * 128)
    for step in (max(gran, 128), 128):
        t = (cap // step) * step
        while t >= step:
            if L % t == 0:
                return t
            t -= step
    return cap  # remainder block handled by Pallas boundary masking


# -----------------------------------------------------------------------------
# Flat (N, C, L) implementations
# -----------------------------------------------------------------------------
def _add_coords_flat_xla(x2: jax.Array, coords: jax.Array) -> jax.Array:
    N = x2.shape[0]
    coords_b = jnp.broadcast_to(coords[None], (N,) + coords.shape)
    return jnp.concatenate([x2, coords_b], axis=1)


def _add_coords_flat_pallas(x2: jax.Array, coords: jax.Array) -> jax.Array:
    N, C, L = x2.shape
    n_coord = coords.shape[0]
    C_out = C + n_coord
    itemsize = jnp.dtype(x2.dtype).itemsize

    capacity = _vmem_capacity_bytes()
    # Double-buffered working-set budget: ~1/4 of VMEM, capped (16 MiB on v7x,
    # 24 MiB on v5e/v6e).  Explicit vmem_limit leaves room for Pallas scratch.
    budget = min(capacity // 4, 24 * 1024 * 1024)
    vmem_limit = int(min(capacity // 2, 64 * 1024 * 1024))

    # Bytes per lane of the double-buffered blocks (in + coords + out).
    per_lane_bytes = 2 * (C + n_coord + C_out) * itemsize
    max_lanes = budget // per_lane_bytes
    if max_lanes < 128:
        # Pathologically large C: even a 128-lane tile exceeds the budget.
        # TODO(synk): add a channel grid axis; fall back to XLA for now.
        return _add_coords_flat_xla(x2, coords)

    # Dtype-aware lane granule: keep each strided-DMA channel row >= 2 KiB
    # (512 lanes for f32, 1024 for bf16, 2048 for int8-width dtypes).
    gran = max(128, 2048 // itemsize)
    tl = _pick_lane_tile(L, max_lanes, gran)

    # Single-batch, single-tile calls would leave v7x's second TensorCore idle:
    # split into two equal lane tiles when that keeps them 128-aligned.
    if N == 1 and tl == L and L % 256 == 0:
        tl = L // 2

    num_t = pl.cdiv(L, tl)
    kernel = functools.partial(_addcoords_kernel, num_in_channels=C)

    return pl.pallas_call(
        kernel,
        out_shape=jax.ShapeDtypeStruct((N, C_out, L), x2.dtype),
        grid_spec=pltpu.PrefetchScalarGridSpec(
            num_scalar_prefetch=0,
            # Batch (n) is the innermost axis: the coords block index depends
            # only on t, so it stays VMEM-resident across all batch elements.
            grid=(num_t, N),
            in_specs=[
                pl.BlockSpec((1, C, tl), lambda t, n: (n, 0, t)),
                pl.BlockSpec((n_coord, tl), lambda t, n: (0, t)),
            ],
            out_specs=pl.BlockSpec((1, C_out, tl), lambda t, n: (n, 0, t)),
        ),
        compiler_params=pltpu.CompilerParams(
            # Every output block is written exactly once -> both axes parallel
            # (lets v7x shard the grid over its two TensorCores; near-zero
            # effect on single-core v5e/v6e).
            dimension_semantics=("parallel", "parallel"),
            vmem_limit_bytes=vmem_limit,
        ),
    )(x2, coords)


# -----------------------------------------------------------------------------
# Coordinate planes (batch-invariant, computed once by XLA)
# -----------------------------------------------------------------------------
def _coord_planes(rank: int, spatial, with_r: bool, dtype) -> jax.Array:
    """Coordinate planes flattened to (n_coord, L), matching the torch module.

    Degenerate spatial dims of size 1 divide by zero and produce inf/nan,
    exactly like the PyTorch code.
    """
    if rank == 1:
        (X,) = spatial
        xx = (jnp.arange(X, dtype=jnp.float32) / (X - 1)) * 2.0 - 1.0
        planes = [xx]
        if with_r:
            planes.append(jnp.sqrt((xx - 0.5) ** 2))
        return jnp.stack(planes, axis=0).astype(dtype)
    if rank == 2:
        H, W = spatial
        # torch: xx_channel[h, w] = h/(H-1)*2-1 (row idx, normalized by dim_y),
        #        yy_channel[h, w] = w/(W-1)*2-1 (col idx, normalized by dim_x).
        xx = (jnp.arange(H, dtype=jnp.float32)[:, None] / (H - 1)) * 2.0 - 1.0
        yy = (jnp.arange(W, dtype=jnp.float32)[None, :] / (W - 1)) * 2.0 - 1.0
        xx = jnp.broadcast_to(xx, (H, W))
        yy = jnp.broadcast_to(yy, (H, W))
        planes = [xx, yy]
        if with_r:
            planes.append(jnp.sqrt((xx - 0.5) ** 2 + (yy - 0.5) ** 2))
        return jnp.stack(planes, axis=0).reshape(len(planes), H * W).astype(dtype)
    raise NotImplementedError("only rank 1 and rank 2 are implemented")


# -----------------------------------------------------------------------------
# Public entry point
# -----------------------------------------------------------------------------
def add_coords(x: jax.Array, rank: int = 2, with_r: bool = False, *,
               force_pallas: bool = False) -> jax.Array:
    """AddCoords forward.

    rank=1: (N, C, X)    -> (N, C+1[+1], X)
    rank=2: (N, C, H, W) -> (N, C+2[+1], H, W)
    """
    if not jnp.issubdtype(x.dtype, jnp.floating):
        raise TypeError(f"add_coords expects a floating dtype, got {x.dtype}")
    if x.ndim != rank + 2:
        raise ValueError(f"rank={rank} expects a {rank + 2}-D input, got {x.shape}")

    N, C = x.shape[:2]
    spatial = x.shape[2:]
    L = 1
    for s in spatial:
        L *= int(s)

    coords = _coord_planes(rank, spatial, with_r, x.dtype)
    n_coord = coords.shape[0]
    C_out = C + n_coord
    x2 = x.reshape(N, C, L)  # free row-major reshape -> lane-dense layout

    # Tiny feature maps: fixed pallas_call launch/step overhead dominates a
    # few-hundred-KiB copy, so let XLA handle it unless explicitly forced.
    out_bytes = N * C_out * L * jnp.dtype(x.dtype).itemsize
    if (not force_pallas) and out_bytes < 256 * 1024:
        out = _add_coords_flat_xla(x2, coords)
    else:
        out = _add_coords_flat_pallas(x2, coords)

    return out.reshape((N, C_out) + spatial)


# -----------------------------------------------------------------------------
# Pure-JAX reference mirroring the PyTorch forward (rank 1 and 2)
# -----------------------------------------------------------------------------
def _reference_add_coords(x: jax.Array, rank: int, with_r: bool) -> jax.Array:
    if rank == 1:
        N, C, X = x.shape
        xx = (jnp.arange(X, dtype=jnp.float32) / (X - 1)) * 2.0 - 1.0
        xx = jnp.broadcast_to(xx[None, None, :], (N, 1, X))
        parts = [x, xx.astype(x.dtype)]
        if with_r:
            parts.append(jnp.sqrt((xx - 0.5) ** 2).astype(x.dtype))
        return jnp.concatenate(parts, axis=1)
    N, C, H, W = x.shape
    xx = jnp.broadcast_to(
        (jnp.arange(H, dtype=jnp.float32)[:, None] / (H - 1)) * 2.0 - 1.0, (H, W))
    yy = jnp.broadcast_to(
        (jnp.arange(W, dtype=jnp.float32)[None, :] / (W - 1)) * 2.0 - 1.0, (H, W))
    xx_b = jnp.broadcast_to(xx[None, None], (N, 1, H, W))
    yy_b = jnp.broadcast_to(yy[None, None], (N, 1, H, W))
    parts = [x, xx_b.astype(x.dtype), yy_b.astype(x.dtype)]
    if with_r:
        rr = jnp.sqrt((xx_b - 0.5) ** 2 + (yy_b - 0.5) ** 2)
        parts.append(rr.astype(x.dtype))
    return jnp.concatenate(parts, axis=1)


if __name__ == "__main__":
    key = jax.random.PRNGKey(0)
    k2d, k1d = jax.random.split(key)

    # rank == 2 (common NCHW path); Pallas path forced so the kernel runs.
    x = jax.random.normal(k2d, (2, 4, 16, 16), dtype=jnp.float32)
    out = jax.block_until_ready(add_coords(x, rank=2, with_r=False, force_pallas=True))
    ref = _reference_add_coords(x, rank=2, with_r=False)
    assert out.shape == (2, 6, 16, 16), out.shape
    assert jnp.allclose(out, ref, atol=1e-6), "rank-2 mismatch vs reference"

    out_r = jax.block_until_ready(add_coords(x, rank=2, with_r=True, force_pallas=True))
    ref_r = _reference_add_coords(x, rank=2, with_r=True)
    assert out_r.shape == (2, 7, 16, 16), out_r.shape
    assert jnp.allclose(out_r, ref_r, atol=1e-6), "rank-2 with_r mismatch vs reference"

    # rank == 1 path through the same kernel.
    x1 = jax.random.normal(k1d, (2, 4, 32), dtype=jnp.float32)
    out1 = jax.block_until_ready(add_coords(x1, rank=1, with_r=True, force_pallas=True))
    ref1 = _reference_add_coords(x1, rank=1, with_r=True)
    assert out1.shape == (2, 6, 32), out1.shape
    assert jnp.allclose(out1, ref1, atol=1e-6), "rank-1 mismatch vs reference"

    # Small-tensor auto path (XLA fallback) stays consistent with the kernel.
    out_fb = jax.block_until_ready(add_coords(x, rank=2, with_r=True))
    assert jnp.allclose(out_fb, ref_r, atol=1e-6), "fallback mismatch vs reference"

    print("KERNEL_OK")
</pallas_src>

<mosaic_0001>
module attributes {stable_mosaic.version = 11 : i64} {
  func.func @_addcoords_kernel(%arg0: i32, %arg1: i32, %arg2: memref<1x4x256xf32, #tpu.memory_space<vmem>>, %arg3: memref<2x256xf32, #tpu.memory_space<vmem>>, %arg4: memref<1x6x256xf32, #tpu.memory_space<vmem>>) attributes {dimension_semantics = [#tpu.dimension_semantics<parallel>, #tpu.dimension_semantics<parallel>], iteration_bounds = array<i64: 1, 2>, scalar_prefetch = 0 : i64, scratch_operands = 0 : i64, tpu.core_type = #tpu.core_type<tc>, window_params = [{transform_indices = @transform_0, window_bounds = array<i64: 1, 4, 256>}, {transform_indices = @transform_1, window_bounds = array<i64: 2, 256>}, {transform_indices = @transform_2, window_bounds = array<i64: 1, 6, 256>}]} {
    %c0 = arith.constant 0 : index
    %c0_0 = arith.constant 0 : index
    %c0_1 = arith.constant 0 : index
    %0 = vector.load %arg2[%c0, %c0_0, %c0_1] : memref<1x4x256xf32, #tpu.memory_space<vmem>>, vector<1x4x256xf32>
    %1 = vector.shape_cast %0 : vector<1x4x256xf32> to vector<4x256xf32>
    %c0_2 = arith.constant 0 : index
    %c0_3 = arith.constant 0 : index
    %c0_4 = arith.constant 0 : index
    %2 = vector.load %arg4[%c0_2, %c0_3, %c0_4] : memref<1x6x256xf32, #tpu.memory_space<vmem>>, vector<1x4x256xf32>
    %3 = vector.shape_cast %2 : vector<1x4x256xf32> to vector<4x256xf32>
    %4 = vector.shape_cast %1 : vector<4x256xf32> to vector<1x4x256xf32>
    tpu.vector_store %arg4[%c0_2, %c0_3, %c0_4], %4 {strides = array<i32>} : memref<1x6x256xf32, #tpu.memory_space<vmem>>, vector<1x4x256xf32>,
    %c0_5 = arith.constant 0 : index
    %c0_6 = arith.constant 0 : index
    %5 = vector.load %arg3[%c0_5, %c0_6] : memref<2x256xf32, #tpu.memory_space<vmem>>, vector<2x256xf32>
    %c0_7 = arith.constant 0 : index
    %c4 = arith.constant 4 : index
    %c0_8 = arith.constant 0 : index
    %6 = vector.load %arg4[%c0_7, %c4, %c0_8] : memref<1x6x256xf32, #tpu.memory_space<vmem>>, vector<1x2x256xf32>
    %7 = vector.shape_cast %6 : vector<1x2x256xf32> to vector<2x256xf32>
    %8 = vector.shape_cast %5 : vector<2x256xf32> to vector<1x2x256xf32>
    tpu.vector_store %arg4[%c0_7, %c4, %c0_8], %8 {strides = array<i32>} : memref<1x6x256xf32, #tpu.memory_space<vmem>>, vector<1x2x256xf32>,
    return
  }
  func.func @transform_0(%arg0: i32, %arg1: i32) -> (i32, i32, i32) {
    %c0_i32 = arith.constant 0 : i32
    %c0_i32_0 = arith.constant 0 : i32
    return %arg1, %c0_i32, %arg0 : i32, i32, i32
  }
  func.func @transform_1(%arg0: i32, %arg1: i32) -> (i32, i32) {
    %c0_i32 = arith.constant 0 : i32
    %c0_i32_0 = arith.constant 0 : i32
    return %c0_i32, %arg0 : i32, i32
  }
  func.func @transform_2(%arg0: i32, %arg1: i32) -> (i32, i32, i32) {
    %c0_i32 = arith.constant 0 : i32
    %c0_i32_0 = arith.constant 0 : i32
    return %arg1, %c0_i32, %arg0 : i32, i32, i32
  }
}

</mosaic_0001>

<bundles_post_ra>
// kernel: tpu_custom_call.1
= control target key start
LH: loop header
LB: loop body
LE: loop exit
PB: predicated region body
PF: predicated region fallthrough
CT: control target
= control target key end

     0   :  { %7 = vsyncpa [#allocation3], 0  ;;  %s672_s0 = inlined_call_operand.hbm [shape: f32[2,4,256], index: 0, kind: input, shape index: {}]   ;;  %s673_s1 = inlined_call_operand.hbm [shape: f32[2,256], index: 1, kind: input, shape index: {}]   ;;  %s674_s2 = inlined_call_operand.vmem [shape: f32[2,6,256], index: 2, kind: output, shape index: {}]  }
   0x1   :  { %9 = vsyncpa [#allocation3 + $0x1], 0 }
   0x2   :  { %10 = vsyncpa [#allocation5], 0  ;;  %s551_s9 = smov 0   ;;  %s553_s10 = smov 0  }
   0x3   :  { %s555_s11 = smov 0   ;;  %s557_s12 = smov 0  }
   0x4   :  { %s559_s13 = smov 0   ;;  %s561_s14 = smov 0  }
   0x5 LB: > { %s339_s15 = sadd.s32 4294967295, %s532_s14   ;;  %p50_p0 = scmp.ne.s32.totalorder %s516_s10, %s512_s9  ;;  %s532_s14 = sphi %s561_s14, %s16_s14   ;;  %s528_s13 = sphi %s559_s13, %s684_s13   ;;  %s524_s12 = sphi %s557_s12, %s683_s12   ;;  %s520_s11 = sphi %s555_s11, %s682_s11   ;;  %s516_s10 = sphi %s553_s10, %s681_s10   ;;  %s512_s9 = sphi %s551_s9, %s680_s9  }
   0x6   : > { %p581_p1 = scmp.eq.s32.totalorder %s339_s15, 0  ;;  %p341_p2 = scmp.ge.s32.totalorder %s532_s14, 1 }
   0x7   : > { %p115_p3 = scmp.lt.s32.totalorder %s532_s14, 3  ;;  %s534_s19 = smov [#allocation4]  }
   0x8   : > { %p589_p4 = por %p581_p1, %p50_p0  ;;  %s131_s20 = sshll.u32 %s534_s19, 4  ;;  %s132_s20 = int_to_ptr.vmem [resolvable:$true] %s131_s20 }
   0x9   : > { %p593_p5 = pnand %p341_p2, %p115_p3  ;;  %s25_s22 = sadd.s32 1, %s528_s13 }
   0xa   : > { %s37_s23 = sadd.s32 1, %s520_s11  ;;  %p26_p8 = scmp.ge.s32.totalorder %s25_s22, 2 }
   0xb   : > { %p363_p6 = pneg %p593_p5  ;;  %s435_s24 = scalar_lea.vmem %s132_s20, 64 }
   0xc   : > { %p436_p10 = scmp.ne.s32.totalorder %s132_s20, %s435_s24  ;;  %p443_p13 = scmp.lt.s32.totalorder %s132_s20, %s132_s20 }
   0xd   : > { %p601_p7 = pnand %p363_p6, %p581_p1  ;;  %p444_p0 = scmp.lt.s32.totalorder %s435_s24, %s435_s24 }
   0xf   : > { %p426_p9 = pneg %p601_p7  ;;  %p445_p2 = por %p444_p0, %p443_p13 }
  0x11   : > { %p438_p11 = pnand %p436_p10, %p426_p9 }
  0x13   : > { %p439_p12 = pneg %p438_p11 }
  0x15   : > { %p446_p3 = pnand %p445_p2, %p439_p12 }
  0x17   : > { %449 = shalt.err (!%p446_p3)
}
  0x18   : > { %366 = dma.hbm_to_vmem [thread:$0]  (!%p601_p7), %s673_s1, 64, %s132_s20, [#allocation5]  }
  0x19   : > { %s686_s22 = smov (%p26_p8, %s25_s22), 0  ;;  %p44_p6 = scmp.ne.s32.totalorder %s520_s11, %s516_s10 }
  0x1a   : > { %p45_p9 = scmp.eq.s32.totalorder %s532_s14, 0  ;;  %s32_s27 = ssub.s32 %s528_s13, %s686_s22 }
  0x1b   : > { %p372_p10 = scmp.lt.s32.totalorder %s532_s14, 2  ;;  %p35_p11 = scmp.eq.s32.totalorder %s32_s27, 0 }
  0x1c   : > { %p46_p12 = por %p45_p9, %p44_p6  ;;  %s142_s28 = sand.u32 1, %s520_s11  }
  0x1d   : > { %s355_s29 = sshll.u32 %s528_s13, 7  ;;  %s344_s3 = sshll.u32 %s142_s28, 3 }
  0x1e   : > { %s625_s30 = scalar_select %p35_p11, %s520_s11, %s37_s23  }
  0x1f   : > { %s154_s6 = scalar_lea.hbm %s672_s0, %s355_s29  ;;  %s146_s7 = scalar_lea.vmem [#allocation2], %s344_s3 }
  0x20   : > { %s156_s8 = sshll.u32 %s146_s7, 4  ;;  %p630_p7 = pnand %p372_p10, %p46_p12  ;;  %s157_s8 = int_to_ptr.vmem [resolvable:$true] %s156_s8 }
  0x21   : > { %s143_s15 = scalar_lea.sflag [#allocation3], %s142_s28  ;;  %s463_s19 = scalar_lea.vmem %s157_s8, 128 }
  0x22   : > { %p452_p8 = pneg %p630_p7  ;;  %p464_p13 = scmp.ne.s32.totalorder %s157_s8, %s463_s19 }
  0x23   : > { %s535_s20 = smov [#allocation2]  }
  0x24   : > { %p466_p0 = pnand %p464_p13, %p452_p8  ;;  %s468_s21 = sshll.u32 %s535_s20, 4  ;;  %s469_s21 = int_to_ptr.vmem [resolvable:$false] %s468_s21 }
  0x25   : > { %s470_s23 = scalar_lea.vmem %s469_s21, 256  ;;  %p471_p3 = scmp.lt.s32.totalorder %s157_s8, %s469_s21 }
  0x26   : > { %p467_p2 = pneg %p466_p0  ;;  %p472_p6 = scmp.lt.s32.totalorder %s470_s23, %s463_s19 }
  0x28   : > { %p473_p9 = por %p472_p6, %p471_p3 }
  0x2a   : > { %p474_p10 = pnand %p473_p9, %p467_p2 }
  0x2c   : > { %477 = shalt.err (!%p474_p10)
}
  0x2d   : > { %370 = dma.hbm_to_vmem [thread:$0]  (!%p630_p7), %s154_s6, 128, %s157_s8, %s143_s15  }
  0x2e   : > { %165 = sbr.rel (%p593_p5) target bundleno = 61 (0x3d), region = 28  ;;  %s167_s24 = sand.u32 (!%p593_p5), 1, %s516_s10  }
  0x2f   : > { %s348_s25 = sshll.u32 (!%p593_p5), %s167_s24, 3  ;;  %s168_s26 = scalar_lea.sflag (!%p593_p5), [#allocation3], %s167_s24 }
  0x30   : > { %s171_s27 = scalar_lea.vmem (!%p593_p5), [#allocation2], %s348_s25 }
  0x33   : > { %503 = dma.done.wait (%p589_p4), %s168_s26, 128  }
  0x34   : > { %505 = vsyncadd (%p589_p4), %s168_s26, 4294967168 }
  0x35   : > { %507 = dma.done.wait (%p581_p1), [#allocation5], 64  }
  0x36   : > { %509 = vsyncadd (%p581_p1), [#allocation5], 4294967232  ;;  %p203_p5 = scmp.lt.s32.totalorder %s524_s12, 1  ;;  %v212_v0 = vld [vmem:[%s171_s27] sm:$0xff] }
  0x37   : > { %v352_v1 = vld.sshfl [vmem:[#allocation4] sm:$0x33 pattern:$0x76325410]  ;;  %v214_v2 = vcombine.high %v212_v0, %v212_v0 }
  0x38   : > { %s688_s12 = smov (!%p203_p5, %s524_s12), 1  ;;  %v227_v3 = vcombine.low %v352_v1, %v352_v1 }
  0x39   : > { %s356_s18 = sshll.u32 %s688_s12, 4 }
  0x3a   : > { %s210_s3 = scalar_lea.vmem %s674_s2, %s356_s18 }
  0x3b   : > { %216 = vst [vmem:[%s210_s3] sm:$0xf] %v212_v0  ;;  %231 = vst [vmem:[%s210_s3 + $0x8] sm:$0x30] %v352_v1 }
  0x3c   : > { %217 = vst [vmem:[%s210_s3 + $0x8] sm:$0xf] %v214_v2  ;;  %230 = vst [vmem:[%s210_s3] sm:$0x30] %v227_v3 }
  0x3d PF: > { %s16_s14 = sadd.s32 1, %s532_s14   ;;  %s680_s9 = smov %s516_s10 }
  0x3e   : > { %p13_p1 = scmp.ge.s32.totalorder %s16_s14, 4   ;;  %s681_s10 = smov %s520_s11 }
  0x3f   : > { %s682_s11 = smov %s625_s30  ;;  %s683_s12 = smov %s528_s13 }
  0x40   : > { %s684_s13 = smov %s686_s22  ;;  %15 = sbr.rel (!%p13_p1) target bundleno = 5 (0x5), region = 73 }
  0x45   :  { %262 = vsyncpa [#allocation3], 1 }
  0x46   :  { %264 = vsyncpa [#allocation3 + $0x1], 1 }
  0x47   :  { %265 = vsyncpa [#allocation5], 1 }

</bundles_post_ra>
